<compile_context>
chip_gen: v5e
topology: v5e:2x2
jax: 0.10.0
libtpu: 0.0.40
codegen_flags: <defaults>
</compile_context>

<pallas_src>
import jax
import jax.numpy as jnp
from jax.experimental import pallas as pl
from jax.experimental.pallas import tpu as pltpu

# ----------------------------- config (GPTConfig) -----------------------------
B = 2             # batch
T = 8             # block_size (sequence length)
C = 32            # n_embd
N_HEAD = 4        # n_head
HS = C // N_HEAD  # head_size
HID = 4 * C       # FFN hidden
EPS = 1e-5        # nn.LayerNorm default eps


def _layer_norm(v, w, b):
    mu = jnp.mean(v, axis=-1, keepdims=True)
    var = jnp.mean((v - mu) ** 2, axis=-1, keepdims=True)
    return (v - mu) * jax.lax.rsqrt(var + EPS) * w + b


# erf via Abramowitz & Stegun 7.1.26 (|error| <= 1.5e-7): add/mul/exp only,
# all of which lower cleanly in Mosaic.
_ERF_P = 0.3275911
_ERF_A = (0.254829592, -0.284496736, 1.421413741, -1.453152027, 1.061405429)


def _erf_approx(x):
    sgn = jnp.where(x >= 0.0, 1.0, -1.0).astype(x.dtype)
    ax = jnp.abs(x)
    t = 1.0 / (1.0 + _ERF_P * ax)
    a1, a2, a3, a4, a5 = _ERF_A
    poly = ((((a5 * t + a4) * t + a3) * t + a2) * t + a1) * t
    return sgn * (1.0 - poly * jnp.exp(-ax * ax))


def _gelu_kernel(x):
    # PyTorch nn.GELU() default (exact erf GELU), erf approximated as above.
    return 0.5 * x * (1.0 + _erf_approx(x * 0.7071067811865476))


def _gelu_exact(x):
    # exact erf GELU (used only in the pure-JAX reference, outside the kernel)
    return 0.5 * x * (1.0 + jax.lax.erf(x / jnp.sqrt(2.0).astype(x.dtype)))


# --------------------------------- kernel -------------------------------------
def block_kernel(x_ref, vec_ref, bqkv_ref, wqkv_ref, wp_ref, w1_ref, w2_ref,
                 mask_ref, o_ref):
    x = x_ref[...]                               # (T, C) f32 (one batch element)
    t, c = x.shape
    hid = w1_ref.shape[-1]
    n_head, head_size, _ = wp_ref.shape          # wp_ref: (H, HS, C)

    # packed small parameters: one (8, 128) slab, all slices start at lane 0
    vecs = vec_ref[...]
    ln1_w, ln1_b = vecs[0:1, :c], vecs[1:2, :c]
    ln2_w, ln2_b = vecs[2:3, :c], vecs[3:4, :c]
    bp = vecs[4:5, :c]
    b1 = vecs[5:6, :hid]
    b2 = vecs[6:7, :c]

    # ---- self-attention branch -------------------------------------------
    ln1x = _layer_norm(x, ln1_w, ln1_b)                                   # (T, C)

    # fused head-batched q/k/v projection: one einsum, head axis leading,
    # no lane-offset slices, no transposes.
    xb = jnp.broadcast_to(ln1x, (3 * n_head, t, c))                       # (3H, T, C)
    qkv = jnp.einsum("gtc,gcd->gtd", xb, wqkv_ref[...],
                     preferred_element_type=jnp.float32) + bqkv_ref[...]  # (3H, T, HS)
    q = qkv[0 * n_head:1 * n_head]          # (H, T, HS) -- leading-dim slices (free)
    k = qkv[1 * n_head:2 * n_head]
    v = qkv[2 * n_head:3 * n_head]

    # all heads at once: one batched score matmul, ONE softmax, one weighted sum
    scale = float(head_size) ** 0.5         # reference MULTIPLIES by sqrt(head_size)
    att = jnp.einsum("hqd,hkd->hqk", q, k,
                     preferred_element_type=jnp.float32) * scale          # (H, T, T)
    att = att + mask_ref[...]               # additive causal mask BEFORE the max
    att = att - jnp.max(att, axis=-1, keepdims=True)
    p = jnp.exp(att)
    p = p / jnp.sum(p, axis=-1, keepdims=True)      # exact divide (no approx recip)
    out = jnp.einsum("hqk,hkd->hqd", p, v,
                     preferred_element_type=jnp.float32)                  # (H, T, HS)

    # output projection: concat_h(out_h) @ wp  ==  sum_h out_h @ wp[h]
    # expressed as ONE batched einsum + leading-axis sum (no head transpose).
    sa = jnp.sum(jnp.einsum("hqd,hdc->hqc", out, wp_ref[...],
                            preferred_element_type=jnp.float32), axis=0)  # (T, C)
    x = x + sa + bp                                                       # residual 1

    # ---- feed-forward branch ---------------------------------------------
    ln2x = _layer_norm(x, ln2_w, ln2_b)
    h1 = _gelu_kernel(jnp.dot(ln2x, w1_ref[...],
                              preferred_element_type=jnp.float32) + b1)   # (T, 4C)
    ffn = jnp.dot(h1, w2_ref[...], preferred_element_type=jnp.float32) + b2
    o_ref[...] = (x + ffn).astype(o_ref.dtype)                            # residual 2


# --------------------------------- wrapper ------------------------------------
def block_forward(x, params):
    b, t, c = x.shape
    n_head = N_HEAD
    hs = c // n_head
    hid = params["w1"].shape[1]

    # --- pack the 7 tiny vectors into one (8, width) slab (one padded tile) ---
    width = ((max(c, hid) + 127) // 128) * 128

    def row(v):
        v = v.reshape(1, -1)
        return jnp.pad(v, ((0, 0), (0, width - v.shape[1])))

    vecs = jnp.concatenate([
        row(params["ln1_w"]), row(params["ln1_b"]),
        row(params["ln2_w"]), row(params["ln2_b"]),
        row(params["bp"]), row(params["b1"]), row(params["b2"]),
        jnp.zeros((1, width), jnp.float32),
    ], axis=0)                                                   # (8, width)

    # --- per-head weight layout so the head axis is a leading batch dim -------
    def w_heads(w):     # (C, C) -> (H, C, HS) ; head h -> cols h*HS:(h+1)*HS
        return jnp.transpose(w.reshape(c, n_head, hs), (1, 0, 2))

    def b_heads(bias):  # (1, C) -> (H, 1, HS)
        return bias.reshape(n_head, 1, hs)

    wqkv_h = jnp.concatenate(
        [w_heads(params["wq"]), w_heads(params["wk"]), w_heads(params["wv"])],
        axis=0)                                                  # (3H, C, HS)
    bqkv_h = jnp.concatenate(
        [b_heads(params["bq"]), b_heads(params["bk"]), b_heads(params["bv"])],
        axis=0)                                                  # (3H, 1, HS)
    wp_h = params["wp"].reshape(n_head, hs, c)                   # (H, HS, C)

    # Precomputed additive causal mask (mirrors the PyTorch `tril` buffer).
    causal = jnp.tril(jnp.ones((t, t), dtype=bool))
    mask_bias = jnp.where(causal, 0.0, -1e30).astype(jnp.float32)   # (T, T)

    x2 = x.reshape(b * t, c)

    out = pl.pallas_call(
        block_kernel,
        out_shape=jax.ShapeDtypeStruct((b * t, c), x.dtype),
        grid=(b,),
        in_specs=[
            pl.BlockSpec((t, c), lambda i: (i, 0)),                       # x rows of batch i
            pl.BlockSpec(vecs.shape, lambda i: (0, 0)),                   # packed vectors
            pl.BlockSpec(bqkv_h.shape, lambda i: (0, 0, 0)),              # qkv biases
            pl.BlockSpec(wqkv_h.shape, lambda i: (0, 0, 0)),              # qkv weights
            pl.BlockSpec(wp_h.shape, lambda i: (0, 0, 0)),                # out-proj weights
            pl.BlockSpec(params["w1"].shape, lambda i: (0, 0)),           # ffn w1
            pl.BlockSpec(params["w2"].shape, lambda i: (0, 0)),           # ffn w2
            pl.BlockSpec((t, t), lambda i: (0, 0)),                       # causal mask
        ],
        out_specs=pl.BlockSpec((t, c), lambda i: (i, 0)),
        compiler_params=pltpu.CompilerParams(
            dimension_semantics=("parallel",)),   # v7x: one batch element per TC
    )(x2, vecs, bqkv_h, wqkv_h, wp_h, params["w1"], params["w2"], mask_bias)
    return out.reshape(b, t, c)


# --------------------------- pure-JAX reference --------------------------------
def block_reference(x, p):
    ln1x = _layer_norm(x, p["ln1_w"], p["ln1_b"])
    q = ln1x @ p["wq"] + p["bq"]
    k = ln1x @ p["wk"] + p["bk"]
    v = ln1x @ p["wv"] + p["bv"]
    t = x.shape[1]
    mask = jnp.tril(jnp.ones((t, t), dtype=bool))
    outs = []
    for h in range(N_HEAD):
        lo, hi = h * HS, (h + 1) * HS
        qs, ks, vs = q[..., lo:hi], k[..., lo:hi], v[..., lo:hi]
        att = jnp.einsum("btd,bsd->bts", qs, ks) * (float(HS) ** 0.5)
        att = jnp.where(mask, att, -jnp.inf)
        prob = jax.nn.softmax(att, axis=-1)
        outs.append(jnp.einsum("bts,bsd->btd", prob, vs))
    sa = jnp.concatenate(outs, axis=-1) @ p["wp"] + p["bp"]
    x = x + sa
    ln2x = _layer_norm(x, p["ln2_w"], p["ln2_b"])
    ffn = _gelu_exact(ln2x @ p["w1"] + p["b1"]) @ p["w2"] + p["b2"]
    return x + ffn


# ------------------------------------ main -------------------------------------
if __name__ == "__main__":
    key = jax.random.PRNGKey(0)
    keys = jax.random.split(key, 20)

    def rnd(k, shape, scale=0.1):
        return (scale * jax.random.normal(k, shape)).astype(jnp.float32)

    # Deterministic synthetic parameters.
    # nn.Linear(in, out) torch weight is (out, in); we store transposed (in, out)
    # so y = x @ W + b.  Biases stored as (1, dim).
    params = {
        "ln1_w": 1.0 + rnd(keys[0], (1, C)), "ln1_b": rnd(keys[1], (1, C)),
        "ln2_w": 1.0 + rnd(keys[2], (1, C)), "ln2_b": rnd(keys[3], (1, C)),
        # per-head q/k/v linears stacked along output dim (head h -> cols h*HS:(h+1)*HS)
        "wq": rnd(keys[4], (C, C)), "bq": rnd(keys[5], (1, C)),
        "wk": rnd(keys[6], (C, C)), "bk": rnd(keys[7], (1, C)),
        "wv": rnd(keys[8], (C, C)), "bv": rnd(keys[9], (1, C)),
        "wp": rnd(keys[10], (C, C)), "bp": rnd(keys[11], (1, C)),
        "w1": rnd(keys[12], (C, HID)), "b1": rnd(keys[13], (1, HID)),
        "w2": rnd(keys[14], (HID, C)), "b2": rnd(keys[15], (1, C)),
    }

    x = rnd(keys[16], (B, T, C), scale=1.0)

    out = block_forward(x, params)
    out = jax.block_until_ready(out)

    ref = block_reference(x, params)
    assert out.shape == (B, T, C)
    # Tolerance back to 1e-4: exact softmax divide (no approx reciprocal);
    # the only kernel-vs-reference deltas are f32 summation order and the
    # 1.5e-7 erf polynomial.
    assert jnp.allclose(out, ref, atol=1e-4, rtol=1e-4), \
        f"max abs err = {jnp.max(jnp.abs(out - ref))}"

    print("KERNEL_OK")
</pallas_src>

<mosaic_0001>
module attributes {stable_mosaic.version = 11 : i64} {
  func.func @block_kernel(%arg0: i32, %arg1: memref<8x32xf32, #tpu.memory_space<vmem>>, %arg2: memref<8x128xf32, #tpu.memory_space<vmem>>, %arg3: memref<12x1x8xf32, #tpu.memory_space<vmem>>, %arg4: memref<12x32x8xf32, #tpu.memory_space<vmem>>, %arg5: memref<4x8x32xf32, #tpu.memory_space<vmem>>, %arg6: memref<32x128xf32, #tpu.memory_space<vmem>>, %arg7: memref<128x32xf32, #tpu.memory_space<vmem>>, %arg8: memref<8x8xf32, #tpu.memory_space<vmem>>, %arg9: memref<8x32xf32, #tpu.memory_space<vmem>>) attributes {dimension_semantics = [#tpu.dimension_semantics<parallel>], iteration_bounds = array<i64: 2>, scalar_prefetch = 0 : i64, scratch_operands = 0 : i64, tpu.core_type = #tpu.core_type<tc>, window_params = [{transform_indices = @transform_0, window_bounds = array<i64: 8, 32>}, {pipeline_mode = #tpu.pipeline_mode<synchronous>, transform_indices = @transform_1, window_bounds = array<i64: 8, 128>}, {pipeline_mode = #tpu.pipeline_mode<synchronous>, transform_indices = @transform_2, window_bounds = array<i64: 12, 1, 8>}, {pipeline_mode = #tpu.pipeline_mode<synchronous>, transform_indices = @transform_3, window_bounds = array<i64: 12, 32, 8>}, {pipeline_mode = #tpu.pipeline_mode<synchronous>, transform_indices = @transform_4, window_bounds = array<i64: 4, 8, 32>}, {pipeline_mode = #tpu.pipeline_mode<synchronous>, transform_indices = @transform_5, window_bounds = array<i64: 32, 128>}, {pipeline_mode = #tpu.pipeline_mode<synchronous>, transform_indices = @transform_6, window_bounds = array<i64: 128, 32>}, {pipeline_mode = #tpu.pipeline_mode<synchronous>, transform_indices = @transform_7, window_bounds = array<i64: 8, 8>}, {transform_indices = @transform_8, window_bounds = array<i64: 8, 32>}]} {
    %c0 = arith.constant 0 : index
    %c0_0 = arith.constant 0 : index
    %0 = vector.load %arg1[%c0, %c0_0] : memref<8x32xf32, #tpu.memory_space<vmem>>, vector<8x32xf32>
    %c0_1 = arith.constant 0 : index
    %c0_2 = arith.constant 0 : index
    %1 = vector.load %arg2[%c0_1, %c0_2] : memref<8x128xf32, #tpu.memory_space<vmem>>, vector<8x128xf32>
    %2 = vector.extract_strided_slice %1 {offsets = [0, 0], sizes = [1, 32], strides = [1, 1]} : vector<8x128xf32> to vector<1x32xf32>
    %3 = vector.extract_strided_slice %1 {offsets = [1, 0], sizes = [1, 32], strides = [1, 1]} : vector<8x128xf32> to vector<1x32xf32>
    %4 = vector.extract_strided_slice %1 {offsets = [2, 0], sizes = [1, 32], strides = [1, 1]} : vector<8x128xf32> to vector<1x32xf32>
    %5 = vector.extract_strided_slice %1 {offsets = [3, 0], sizes = [1, 32], strides = [1, 1]} : vector<8x128xf32> to vector<1x32xf32>
    %6 = vector.extract_strided_slice %1 {offsets = [4, 0], sizes = [1, 32], strides = [1, 1]} : vector<8x128xf32> to vector<1x32xf32>
    %7 = vector.extract_strided_slice %1 {offsets = [5, 0], sizes = [1, 128], strides = [1, 1]} : vector<8x128xf32> to vector<1x128xf32>
    %8 = vector.extract_strided_slice %1 {offsets = [6, 0], sizes = [1, 32], strides = [1, 1]} : vector<8x128xf32> to vector<1x32xf32>
    %cst = arith.constant dense<0.000000e+00> : vector<8xf32>
    %9 = vector.multi_reduction <add>, %0, %cst [1] : vector<8x32xf32> to vector<8xf32>
    %10 = vector.shape_cast %9 : vector<8xf32> to vector<8x1xf32>
    %cst_3 = arith.constant 3.200000e+01 : f32
    %11 = vector.broadcast %cst_3 : f32 to vector<8x1xf32>
    %12 = arith.divf %10, %11 : vector<8x1xf32>
    %13 = vector.broadcast %12 : vector<8x1xf32> to vector<8x32xf32>
    %14 = arith.subf %0, %13 : vector<8x32xf32>
    %15 = arith.mulf %14, %14 : vector<8x32xf32>
    %cst_4 = arith.constant dense<0.000000e+00> : vector<8xf32>
    %16 = vector.multi_reduction <add>, %15, %cst_4 [1] : vector<8x32xf32> to vector<8xf32>
    %17 = vector.shape_cast %16 : vector<8xf32> to vector<8x1xf32>
    %cst_5 = arith.constant 3.200000e+01 : f32
    %18 = vector.broadcast %cst_5 : f32 to vector<8x1xf32>
    %19 = arith.divf %17, %18 : vector<8x1xf32>
    %20 = vector.broadcast %12 : vector<8x1xf32> to vector<8x32xf32>
    %21 = arith.subf %0, %20 : vector<8x32xf32>
    %cst_6 = arith.constant 9.99999974E-6 : f32
    %22 = vector.broadcast %cst_6 : f32 to vector<8x1xf32>
    %23 = arith.addf %19, %22 : vector<8x1xf32>
    %24 = math.rsqrt %23 : vector<8x1xf32>
    %25 = vector.broadcast %24 : vector<8x1xf32> to vector<8x32xf32>
    %26 = arith.mulf %21, %25 : vector<8x32xf32>
    %27 = vector.broadcast %2 : vector<1x32xf32> to vector<8x32xf32>
    %28 = arith.mulf %26, %27 : vector<8x32xf32>
    %29 = vector.broadcast %3 : vector<1x32xf32> to vector<8x32xf32>
    %30 = arith.addf %28, %29 : vector<8x32xf32>
    %31 = vector.shape_cast %30 : vector<8x32xf32> to vector<1x8x32xf32>
    %32 = vector.broadcast %31 : vector<1x8x32xf32> to vector<12x8x32xf32>
    %c0_7 = arith.constant 0 : index
    %c0_8 = arith.constant 0 : index
    %c0_9 = arith.constant 0 : index
    %33 = vector.load %arg4[%c0_7, %c0_8, %c0_9] : memref<12x32x8xf32, #tpu.memory_space<vmem>>, vector<12x32x8xf32>
    "tpu.trace_start"() <{level = 10 : i32, message = "gtc,gcd->gtd"}> : () -> ()
    %cst_10 = arith.constant dense<0.000000e+00> : vector<12x8x8xf32>
    %34 = tpu.matmul %32, %33, %cst_10 {dimension_numbers = #tpu.dot_dimension_numbers<[2], [1], [1], [2], [0, 0, 0, 1, 1, 2], [0], [0]>} : vector<12x8x32xf32>, vector<12x32x8xf32>, vector<12x8x8xf32> -> vector<12x8x8xf32>
    "tpu.trace_stop"() : () -> ()
    %c0_11 = arith.constant 0 : index
    %c0_12 = arith.constant 0 : index
    %c0_13 = arith.constant 0 : index
    %35 = vector.load %arg3[%c0_11, %c0_12, %c0_13] : memref<12x1x8xf32, #tpu.memory_space<vmem>>, vector<12x1x8xf32>
    %36 = vector.broadcast %35 : vector<12x1x8xf32> to vector<12x8x8xf32>
    %37 = arith.addf %34, %36 : vector<12x8x8xf32>
    %38 = vector.extract_strided_slice %37 {offsets = [0, 0, 0], sizes = [4, 8, 8], strides = [1, 1, 1]} : vector<12x8x8xf32> to vector<4x8x8xf32>
    %39 = vector.extract_strided_slice %37 {offsets = [4, 0, 0], sizes = [4, 8, 8], strides = [1, 1, 1]} : vector<12x8x8xf32> to vector<4x8x8xf32>
    %40 = vector.extract_strided_slice %37 {offsets = [8, 0, 0], sizes = [4, 8, 8], strides = [1, 1, 1]} : vector<12x8x8xf32> to vector<4x8x8xf32>
    "tpu.trace_start"() <{level = 10 : i32, message = "hqd,hkd->hqk"}> : () -> ()
    %cst_14 = arith.constant dense<0.000000e+00> : vector<4x8x8xf32>
    %41 = tpu.matmul %38, %39, %cst_14 {dimension_numbers = #tpu.dot_dimension_numbers<[2], [2], [1], [1], [0, 0, 0, 1, 1, 1], [0], [0]>} : vector<4x8x8xf32>, vector<4x8x8xf32>, vector<4x8x8xf32> -> vector<4x8x8xf32>
    "tpu.trace_stop"() : () -> ()
    %cst_15 = arith.constant 2.82842708 : f32
    %42 = vector.broadcast %cst_15 : f32 to vector<4x8x8xf32>
    %43 = arith.mulf %41, %42 : vector<4x8x8xf32>
    %c0_16 = arith.constant 0 : index
    %c0_17 = arith.constant 0 : index
    %44 = vector.load %arg8[%c0_16, %c0_17] : memref<8x8xf32, #tpu.memory_space<vmem>>, vector<8x8xf32>
    %45 = vector.shape_cast %44 : vector<8x8xf32> to vector<1x8x8xf32>
    %46 = vector.broadcast %45 : vector<1x8x8xf32> to vector<4x8x8xf32>
    %47 = arith.addf %43, %46 : vector<4x8x8xf32>
    %cst_18 = arith.constant dense<0xFF800000> : vector<4x8xf32>
    %48 = vector.multi_reduction <maximumf>, %47, %cst_18 [2] : vector<4x8x8xf32> to vector<4x8xf32>
    %49 = vector.shape_cast %48 : vector<4x8xf32> to vector<4x8x1xf32>
    %50 = vector.broadcast %49 : vector<4x8x1xf32> to vector<4x8x8xf32>
    %51 = arith.subf %47, %50 : vector<4x8x8xf32>
    %52 = math.exp %51 : vector<4x8x8xf32>
    %cst_19 = arith.constant dense<0.000000e+00> : vector<4x8xf32>
    %53 = vector.multi_reduction <add>, %52, %cst_19 [2] : vector<4x8x8xf32> to vector<4x8xf32>
    %54 = vector.shape_cast %53 : vector<4x8xf32> to vector<4x8x1xf32>
    %55 = vector.broadcast %54 : vector<4x8x1xf32> to vector<4x8x8xf32>
    %56 = arith.divf %52, %55 : vector<4x8x8xf32>
    "tpu.trace_start"() <{level = 10 : i32, message = "hqk,hkd->hqd"}> : () -> ()
    %cst_20 = arith.constant dense<0.000000e+00> : vector<4x8x8xf32>
    %57 = tpu.matmul %56, %40, %cst_20 {dimension_numbers = #tpu.dot_dimension_numbers<[2], [1], [1], [2], [0, 0, 0, 1, 1, 2], [0], [0]>} : vector<4x8x8xf32>, vector<4x8x8xf32>, vector<4x8x8xf32> -> vector<4x8x8xf32>
    "tpu.trace_stop"() : () -> ()
    %c0_21 = arith.constant 0 : index
    %c0_22 = arith.constant 0 : index
    %c0_23 = arith.constant 0 : index
    %58 = vector.load %arg5[%c0_21, %c0_22, %c0_23] : memref<4x8x32xf32, #tpu.memory_space<vmem>>, vector<4x8x32xf32>
    "tpu.trace_start"() <{level = 10 : i32, message = "hqd,hdc->hqc"}> : () -> ()
    %cst_24 = arith.constant dense<0.000000e+00> : vector<4x8x32xf32>
    %59 = tpu.matmul %57, %58, %cst_24 {dimension_numbers = #tpu.dot_dimension_numbers<[2], [1], [1], [2], [0, 0, 0, 1, 1, 2], [0], [0]>} : vector<4x8x8xf32>, vector<4x8x32xf32>, vector<4x8x32xf32> -> vector<4x8x32xf32>
    "tpu.trace_stop"() : () -> ()
    %cst_25 = arith.constant dense<0.000000e+00> : vector<8x32xf32>
    %60 = vector.multi_reduction <add>, %59, %cst_25 [0] : vector<4x8x32xf32> to vector<8x32xf32>
    %61 = arith.addf %0, %60 : vector<8x32xf32>
    %62 = vector.broadcast %6 : vector<1x32xf32> to vector<8x32xf32>
    %63 = arith.addf %61, %62 : vector<8x32xf32>
    %cst_26 = arith.constant dense<0.000000e+00> : vector<8xf32>
    %64 = vector.multi_reduction <add>, %63, %cst_26 [1] : vector<8x32xf32> to vector<8xf32>
    %65 = vector.shape_cast %64 : vector<8xf32> to vector<8x1xf32>
    %cst_27 = arith.constant 3.200000e+01 : f32
    %66 = vector.broadcast %cst_27 : f32 to vector<8x1xf32>
    %67 = arith.divf %65, %66 : vector<8x1xf32>
    %68 = vector.broadcast %67 : vector<8x1xf32> to vector<8x32xf32>
    %69 = arith.subf %63, %68 : vector<8x32xf32>
    %70 = arith.mulf %69, %69 : vector<8x32xf32>
    %cst_28 = arith.constant dense<0.000000e+00> : vector<8xf32>
    %71 = vector.multi_reduction <add>, %70, %cst_28 [1] : vector<8x32xf32> to vector<8xf32>
    %72 = vector.shape_cast %71 : vector<8xf32> to vector<8x1xf32>
    %cst_29 = arith.constant 3.200000e+01 : f32
    %73 = vector.broadcast %cst_29 : f32 to vector<8x1xf32>
    %74 = arith.divf %72, %73 : vector<8x1xf32>
    %75 = vector.broadcast %67 : vector<8x1xf32> to vector<8x32xf32>
    %76 = arith.subf %63, %75 : vector<8x32xf32>
    %cst_30 = arith.constant 9.99999974E-6 : f32
    %77 = vector.broadcast %cst_30 : f32 to vector<8x1xf32>
    %78 = arith.addf %74, %77 : vector<8x1xf32>
    %79 = math.rsqrt %78 : vector<8x1xf32>
    %80 = vector.broadcast %79 : vector<8x1xf32> to vector<8x32xf32>
    %81 = arith.mulf %76, %80 : vector<8x32xf32>
    %82 = vector.broadcast %4 : vector<1x32xf32> to vector<8x32xf32>
    %83 = arith.mulf %81, %82 : vector<8x32xf32>
    %84 = vector.broadcast %5 : vector<1x32xf32> to vector<8x32xf32>
    %85 = arith.addf %83, %84 : vector<8x32xf32>
    %c0_31 = arith.constant 0 : index
    %c0_32 = arith.constant 0 : index
    %86 = vector.load %arg6[%c0_31, %c0_32] : memref<32x128xf32, #tpu.memory_space<vmem>>, vector<32x128xf32>
    %cst_33 = arith.constant dense<0.000000e+00> : vector<8x128xf32>
    %87 = tpu.matmul %85, %86, %cst_33 {dimension_numbers = #tpu.dot_dimension_numbers<[1], [0], [0], [1], [0, 0, 1, 1], [], []>} : vector<8x32xf32>, vector<32x128xf32>, vector<8x128xf32> -> vector<8x128xf32>
    %88 = vector.broadcast %7 : vector<1x128xf32> to vector<8x128xf32>
    %89 = arith.addf %87, %88 : vector<8x128xf32>
    %cst_34 = arith.constant 5.000000e-01 : f32
    %90 = vector.broadcast %cst_34 : f32 to vector<8x128xf32>
    %91 = arith.mulf %90, %89 : vector<8x128xf32>
    %cst_35 = arith.constant 0.707106769 : f32
    %92 = vector.broadcast %cst_35 : f32 to vector<8x128xf32>
    %93 = arith.mulf %89, %92 : vector<8x128xf32>
    %cst_36 = arith.constant 0.000000e+00 : f32
    %94 = vector.broadcast %cst_36 : f32 to vector<8x128xf32>
    %95 = arith.cmpf oge, %93, %94 : vector<8x128xf32>
    %cst_37 = arith.constant 1.000000e+00 : f32
    %cst_38 = arith.constant -1.000000e+00 : f32
    %96 = vector.broadcast %cst_37 : f32 to vector<8x128xf32>
    %97 = vector.broadcast %cst_38 : f32 to vector<8x128xf32>
    %98 = arith.select %95, %96, %97 : vector<8x128xi1>, vector<8x128xf32>
    %99 = math.absf %93 : vector<8x128xf32>
    %cst_39 = arith.constant 0.327591091 : f32
    %100 = vector.broadcast %cst_39 : f32 to vector<8x128xf32>
    %101 = arith.mulf %100, %99 : vector<8x128xf32>
    %cst_40 = arith.constant 1.000000e+00 : f32
    %102 = vector.broadcast %cst_40 : f32 to vector<8x128xf32>
    %103 = arith.addf %102, %101 : vector<8x128xf32>
    %cst_41 = arith.constant 1.000000e+00 : f32
    %104 = vector.broadcast %cst_41 : f32 to vector<8x128xf32>
    %105 = arith.divf %104, %103 : vector<8x128xf32>
    %cst_42 = arith.constant 1.06140542 : f32
    %106 = vector.broadcast %cst_42 : f32 to vector<8x128xf32>
    %107 = arith.mulf %106, %105 : vector<8x128xf32>
    %cst_43 = arith.constant -1.45315206 : f32
    %108 = vector.broadcast %cst_43 : f32 to vector<8x128xf32>
    %109 = arith.addf %107, %108 : vector<8x128xf32>
    %110 = arith.mulf %109, %105 : vector<8x128xf32>
    %cst_44 = arith.constant 1.42141378 : f32
    %111 = vector.broadcast %cst_44 : f32 to vector<8x128xf32>
    %112 = arith.addf %110, %111 : vector<8x128xf32>
    %113 = arith.mulf %112, %105 : vector<8x128xf32>
    %cst_45 = arith.constant -0.284496725 : f32
    %114 = vector.broadcast %cst_45 : f32 to vector<8x128xf32>
    %115 = arith.addf %113, %114 : vector<8x128xf32>
    %116 = arith.mulf %115, %105 : vector<8x128xf32>
    %cst_46 = arith.constant 0.254829586 : f32
    %117 = vector.broadcast %cst_46 : f32 to vector<8x128xf32>
    %118 = arith.addf %116, %117 : vector<8x128xf32>
    %119 = arith.mulf %118, %105 : vector<8x128xf32>
    %cst_47 = arith.constant 0.000000e+00 : f32
    %120 = vector.broadcast %cst_47 : f32 to vector<8x128xf32>
    %121 = arith.subf %120, %99 : vector<8x128xf32>
    %122 = arith.mulf %121, %99 : vector<8x128xf32>
    %123 = math.exp %122 : vector<8x128xf32>
    %124 = arith.mulf %119, %123 : vector<8x128xf32>
    %cst_48 = arith.constant 1.000000e+00 : f32
    %125 = vector.broadcast %cst_48 : f32 to vector<8x128xf32>
    %126 = arith.subf %125, %124 : vector<8x128xf32>
    %127 = arith.mulf %98, %126 : vector<8x128xf32>
    %cst_49 = arith.constant 1.000000e+00 : f32
    %128 = vector.broadcast %cst_49 : f32 to vector<8x128xf32>
    %129 = arith.addf %128, %127 : vector<8x128xf32>
    %130 = arith.mulf %91, %129 : vector<8x128xf32>
    %c0_50 = arith.constant 0 : index
    %c0_51 = arith.constant 0 : index
    %131 = vector.load %arg7[%c0_50, %c0_51] : memref<128x32xf32, #tpu.memory_space<vmem>>, vector<128x32xf32>
    %cst_52 = arith.constant dense<0.000000e+00> : vector<8x32xf32>
    %132 = tpu.matmul %130, %131, %cst_52 {dimension_numbers = #tpu.dot_dimension_numbers<[1], [0], [0], [1], [0, 0, 1, 1], [], []>} : vector<8x128xf32>, vector<128x32xf32>, vector<8x32xf32> -> vector<8x32xf32>
    %133 = vector.broadcast %8 : vector<1x32xf32> to vector<8x32xf32>
    %134 = arith.addf %132, %133 : vector<8x32xf32>
    %135 = arith.addf %63, %134 : vector<8x32xf32>
    %c0_53 = arith.constant 0 : index
    %c0_54 = arith.constant 0 : index
    %136 = vector.load %arg9[%c0_53, %c0_54] : memref<8x32xf32, #tpu.memory_space<vmem>>, vector<8x32xf32>
    tpu.vector_store %arg9[%c0_53, %c0_54], %135 {strides = array<i32>} : memref<8x32xf32, #tpu.memory_space<vmem>>, vector<8x32xf32>,
    return
  }
  func.func @transform_0(%arg0: i32) -> (i32, i32) {
    %c0_i32 = arith.constant 0 : i32
    %c0_i32_0 = arith.constant 0 : i32
    return %arg0, %c0_i32 : i32, i32
  }
  func.func @transform_1(%arg0: i32) -> (i32, i32) {
    %c0_i32 = arith.constant 0 : i32
    %c0_i32_0 = arith.constant 0 : i32
    %c0_i32_1 = arith.constant 0 : i32
    return %c0_i32, %c0_i32_0 : i32, i32
  }
  func.func @transform_2(%arg0: i32) -> (i32, i32, i32) {
    %c0_i32 = arith.constant 0 : i32
    %c0_i32_0 = arith.constant 0 : i32
    %c0_i32_1 = arith.constant 0 : i32
    %c0_i32_2 = arith.constant 0 : i32
    return %c0_i32, %c0_i32_0, %c0_i32_1 : i32, i32, i32
  }
  func.func @transform_3(%arg0: i32) -> (i32, i32, i32) {
    %c0_i32 = arith.constant 0 : i32
    %c0_i32_0 = arith.constant 0 : i32
    %c0_i32_1 = arith.constant 0 : i32
    %c0_i32_2 = arith.constant 0 : i32
    return %c0_i32, %c0_i32_0, %c0_i32_1 : i32, i32, i32
  }
  func.func @transform_4(%arg0: i32) -> (i32, i32, i32) {
    %c0_i32 = arith.constant 0 : i32
    %c0_i32_0 = arith.constant 0 : i32
    %c0_i32_1 = arith.constant 0 : i32
    %c0_i32_2 = arith.constant 0 : i32
    return %c0_i32, %c0_i32_0, %c0_i32_1 : i32, i32, i32
  }
  func.func @transform_5(%arg0: i32) -> (i32, i32) {
    %c0_i32 = arith.constant 0 : i32
    %c0_i32_0 = arith.constant 0 : i32
    %c0_i32_1 = arith.constant 0 : i32
    return %c0_i32, %c0_i32_0 : i32, i32
  }
  func.func @transform_6(%arg0: i32) -> (i32, i32) {
    %c0_i32 = arith.constant 0 : i32
    %c0_i32_0 = arith.constant 0 : i32
    %c0_i32_1 = arith.constant 0 : i32
    return %c0_i32, %c0_i32_0 : i32, i32
  }
  func.func @transform_7(%arg0: i32) -> (i32, i32) {
    %c0_i32 = arith.constant 0 : i32
    %c0_i32_0 = arith.constant 0 : i32
    %c0_i32_1 = arith.constant 0 : i32
    return %c0_i32, %c0_i32_0 : i32, i32
  }
  func.func @transform_8(%arg0: i32) -> (i32, i32) {
    %c0_i32 = arith.constant 0 : i32
    %c0_i32_0 = arith.constant 0 : i32
    return %arg0, %c0_i32 : i32, i32
  }
}

</mosaic_0001>

<bundles_post_ra>
// kernel: tpu_custom_call.1
= control target key start
LH: loop header
LB: loop body
LE: loop exit
PB: predicated region body
PF: predicated region fallthrough
CT: control target
= control target key end

     0   :  { %13 = vsyncpa [#allocation3], 0  ;;  %s1952_s0 = inlined_call_operand.vmem [shape: f32[16,32], index: 0, kind: input, shape index: {}]   ;;  %s1953_s1 = inlined_call_operand.vmem [shape: f32[8,128], index: 1, kind: input, shape index: {}]   ;;  %s1954_s2 = inlined_call_operand.vmem [shape: f32[12,1,8], index: 2, kind: input, shape index: {}]   ;;  %s1955_s3 = inlined_call_operand.vmem [shape: f32[12,32,8], index: 3, kind: input, shape index: {}]   ;;  %s1956_s4 = inlined_call_operand.vmem [shape: f32[4,8,32], index: 4, kind: input, shape index: {}]   ;;  %s1957_s5 = inlined_call_operand.vmem [shape: f32[32,128], index: 5, kind: input, shape index: {}]   ;;  %s1958_s6 = inlined_call_operand.vmem [shape: f32[128,32], index: 6, kind: input, shape index: {}]   ;;  %s1959_s7 = inlined_call_operand.vmem [shape: f32[8,8], index: 7, kind: input, shape index: {}]   ;;  %s1960_s8 = inlined_call_operand.hbm [shape: f32[16,32], index: 8, kind: output, shape index: {}]  }
   0x1   :  { %15 = vsyncpa [#allocation3 + $0x1], 0  ;;  %s1521_s27 = smov 0   ;;  %s1523_s28 = smov 0  }
   0x2   :  { %s1525_s29 = smov 0   ;;  %s1527_s30 = smov 0  }
   0x3 LB: > { %s1542_s9 = sadd.s32 4294967295, %s1472_s30   ;;  %s1292_s10 = sadd.s32 4294967294, %s1472_s30   ;;  %s1472_s30 = sphi %s1527_s30, %s1966_s30   ;;  %s1468_s29 = sphi %s1525_s29, %s1965_s29   ;;  %s1464_s28 = sphi %s1523_s28, %s1964_s28   ;;  %s1460_s27 = sphi %s1521_s27, %s1963_s27  }
   0x4   : > { %s1546_s11 = sadd.s32 1, %s1472_s30   ;;  %s201_s12 = sadd.s32 1, %s1468_s29 }
   0x5   : > { %s198_s13 = ssub.s32 %s1472_s30, %s1546_s11  ;;  %p211_p0 = scmp.ne.s32.totalorder %s1468_s29, %s1464_s28 }
   0x6   : > { %p199_p1 = scmp.eq.s32.totalorder %s198_s13, 0  ;;  %p212_p2 = scmp.eq.s32.totalorder %s1542_s9, 1 }
   0x7   : > { %p217_p3 = scmp.ne.s32.totalorder %s1464_s28, %s1460_s27  ;;  %p218_p4 = scmp.eq.s32.totalorder %s1292_s10, 1 }
   0x8   : > { %s1557_s14 = scalar_select %p199_p1, %s1468_s29, %s201_s12  }
   0x9   : > { %p1559_p5 = por %p212_p2, %p211_p0  ;;  %p1563_p6 = por %p218_p4, %p217_p3 }
   0xa   : > { %p1295_p7 = scmp.ge.s32.totalorder %s1472_s30, 1  ;;  %p264_p8 = scmp.lt.s32.totalorder %s1472_s30, 3 }
   0xc   : > { %p265_p9 = pnand %p1295_p7, %p264_p8 }
   0xd   : > { %p297_p10 = scmp.lt.s32.totalorder (!%p265_p9), %s1542_s9, 1  ;;  %s294_s25 = sand.u32 (!%p265_p9), 1, %s1464_s28  }
   0xe   : > { %268 = sbr.rel (%p265_p9) target bundleno = 1706 (0x6aa), region = 52  ;;  %s1296_s26 = sshll.u32 (!%p265_p9), %s294_s25, 3 }
   0xf   : > { %s1328_s10 = sshll.u32 (!%p265_p9), %s1542_s9, 3 }
  0x13   : > { %s298_s17 = scalar_select %p297_p10, %s1542_s9, 1  ;;  %vm303_vm0 = vcmask 261120   ;;  %v1474_v2 = vmov 32.0   ;;  %v340_v14 = vld [vmem:[%s1955_s3 + $0x18] sm:$0xff]  ;;  %v339_v18 = vld [vmem:[%s1955_s3 + $0x10] sm:$0xff]  ;;  %v338_v22 = vld [vmem:[%s1955_s3 + $0x8] sm:$0xff] }
  0x14   : > { %1384 = vrcp.f32 %v1474_v2  ;;  %v344_v15 = vld [vmem:[%s1955_s3 + $0x38] sm:$0xff]  ;;  %448 = vmatpush.msra.mxu0 %v340_v14  ;;  %v343_v19 = vld [vmem:[%s1955_s3 + $0x30] sm:$0xff]  ;;  %v342_v23 = vld [vmem:[%s1955_s3 + $0x28] sm:$0xff]  ;;  %vm676_vm5 = vcmask 64512  }
  0x15   : > { %s1297_s18 = sshll.u32 %s298_s17, 3  ;;  %v352_v16 = vld [vmem:[%s1955_s3 + $0x78] sm:$0xff]  ;;  %468 = vmatpush.msra.mxu2 %v344_v15  ;;  %v351_v20 = vld [vmem:[%s1955_s3 + $0x70] sm:$0xff]  ;;  %v350_v24 = vld [vmem:[%s1955_s3 + $0x68] sm:$0xff]  ;;  %s1228_s17 = scalar_lea.hbm %s1960_s8, %s1328_s10 }
  0x16   : > { %s300_s21 = scalar_lea.vmem %s1952_s0, %s1297_s18  ;;  %v376_v17 = vld [vmem:[%s1955_s3 + $0x138] sm:$0xff]  ;;  %508 = vmatpush.msra.mxu3 %v352_v16  ;;  %449 = vmatpush.msra.mxu0 %v339_v18  ;;  %v375_v21 = vld [vmem:[%s1955_s3 + $0x130] sm:$0xff]  ;;  %v374_v25 = vld [vmem:[%s1955_s3 + $0x128] sm:$0xff]  ;;  %s296_s18 = scalar_lea.vmem [#allocation2], %s1296_s26 }
  0x17   : > { %v1574_v0 = vld [vmem:[%s300_s21] sm:$0xff]  ;;  %628 = vmatpush.msra.mxu1 %v376_v17  ;;  %469 = vmatpush.msra.mxu2 %v343_v19  ;;  %v348_v30 = vld [vmem:[%s1955_s3 + $0x58] sm:$0xff]  ;;  %v347_v33 = vld [vmem:[%s1955_s3 + $0x50] sm:$0xff]  ;;  %s1230_s19 = sshll.u32 %s296_s18, 4  ;;  %s1232_s20 = sshll.u32 %s1228_s17, 4  ;;  %s1231_s19 = int_to_ptr.vmem [resolvable:$true] %s1230_s19  ;;  %s1233_s20 = int_to_ptr.hbm [resolvable:$true] %s1232_s20 }
  0x18   : > { %v304_v1 = vsel %vm303_vm0, %v1574_v0, 0.0  ;;  %509 = vmatpush.msra.mxu3 %v351_v20  ;;  %450 = vmatpush.msra.mxu0 %v338_v22  ;;  %v337_v26 = vld [vmem:[%s1955_s3] sm:$0xff]  ;;  %v356_v31 = vld [vmem:[%s1955_s3 + $0x98] sm:$0xff]  ;;  %v355_v34 = vld [vmem:[%s1955_s3 + $0x90] sm:$0xff]  ;;  %s1218_s21 = scalar_lea.sflag [#allocation3], %s294_s25  ;;  %s1424_s9 = sshra.s32 %s1233_s20, 4  ;;  %s1425_s9 = int_to_ptr.hbm [resolvable:$true] %s1424_s9 }
  0x19   : > { %305 = vadd.xlane.f32.xlu0 %v304_v1  ;;  %629 = vmatpush.msra.mxu1 %v375_v21  ;;  %v341_v27 = vld [vmem:[%s1955_s3 + $0x20] sm:$0xff]  ;;  %v360_v32 = vld [vmem:[%s1955_s3 + $0xb8] sm:$0xff]  ;;  %v359_v35 = vld [vmem:[%s1955_s3 + $0xb0] sm:$0xff]  ;;  %s1426_s22 = scalar_lea.hbm %s1425_s9, 8  ;;  %s1430_s26 = scalar_lea.hbm %s1960_s8, 16 }
  0x1a   : > { %v1385_v3 = vpop.eup %1384  ;;  %470 = vmatpush.msra.mxu2 %v342_v23  ;;  %510 = vmatpush.msra.mxu3 %v350_v24  ;;  %v349_v28 = vld [vmem:[%s1955_s3 + $0x60] sm:$0xff]  ;;  %v346_v37 = vld [vmem:[%s1955_s3 + $0x48] sm:$0xff]  ;;  %v364_v58 = vld [vmem:[%s1955_s3 + $0xd8] sm:$0xff]  ;;  %p1427_p11 = scmp.ne.s32.totalorder %s1425_s9, %s1426_s22  ;;  %p1431_p0 = scmp.lt.s32.totalorder %s1425_s9, %s1960_s8 }
  0x1b   : > { %v308_v4 = vmul.f32 32.0, %v1385_v3  ;;  %vm312_vm1 = vweird.f32 %v1385_v3  ;;  %630 = vmatpush.msra.mxu1 %v374_v25  ;;  %451 = vmatpush.msra.mxu0 %v337_v26  ;;  %v373_v29 = vld [vmem:[%s1955_s3 + $0x120] sm:$0xff]  ;;  %v354_v38 = vld [vmem:[%s1955_s3 + $0x88] sm:$0xff]  ;;  %v368_v59 = vld [vmem:[%s1955_s3 + $0xf8] sm:$0xff]  ;;  %p1432_p1 = scmp.lt.s32.totalorder %s1430_s26, %s1426_s22 }
  0x1c   : > { %471 = vmatpush.msra.mxu2 %v341_v27  ;;  %511 = vmatpush.msra.mxu3 %v349_v28  ;;  %v358_v40 = vld [vmem:[%s1955_s3 + $0xa8] sm:$0xff]  ;;  %v345_v41 = vld [vmem:[%s1955_s3 + $0x40] sm:$0xff]  ;;  %v372_v60 = vld [vmem:[%s1955_s3 + $0x118] sm:$0xff]  ;;  %p1428_p12 = pnand %p1427_p11, %p1559_p5 }
  0x1d   : > { %v309_v5 = vsub.f32 1.0, %v308_v4  ;;  %631 = vmatpush.msra.mxu1 %v373_v29  ;;  %528 = vmatpush.msrb.mxu0 %v356_v31  ;;  %v353_v42 = vld [vmem:[%s1955_s3 + $0x80] sm:$0xff]  ;;  %v363_v61 = vld [vmem:[%s1955_s3 + $0xd0] sm:$0xff]  ;;  %v362_v1 = vld [vmem:[%s1955_s3 + $0xc8] sm:$0xff]  ;;  %p1433_p2 = por %p1432_p1, %p1431_p0 }
  0x1e   : > { %488 = vmatpush.msrb.mxu2 %v348_v30  ;;  %548 = vmatpush.msrb.mxu3 %v360_v32  ;;  %v357_v44 = vld [vmem:[%s1955_s3 + $0xa0] sm:$0xff]  ;;  %v367_v62 = vld [vmem:[%s1955_s3 + $0xf0] sm:$0xff]  ;;  %v366_v2 = vld [vmem:[%s1955_s3 + $0xe8] sm:$0xff]  ;;  %p1429_p13 = pneg %p1428_p12 }
  0x1f   : > { %v310_v6 = vmul.f32 %v1385_v3, %v309_v5  ;;  %529 = vmatpush.msrb.mxu0 %v355_v34  ;;  %v1675_v49 = vld [vmem:[%s1953_s1] sm:$0xff]  ;;  %v371_v63 = vld [vmem:[%s1955_s3 + $0x110] sm:$0xff]  ;;  %v1373_v25 = vld [vmem:[%s1954_s2 + $0x9] ss:$0 sm:$0xff] }
  0x20   : > { %489 = vmatpush.msrb.mxu2 %v347_v33  ;;  %549 = vmatpush.msrb.mxu3 %v359_v35  ;;  %v333_v52 = vperm.slane %v1675_v49, 0  ;;  %v335_v54 = vperm.slane %v1675_v49, 1  ;;  %v361_v4 = vld [vmem:[%s1955_s3 + $0xc0] sm:$0xff]  ;;  %v1379_v26 = vld [vmem:[%s1954_s2 + $0x8] ss:$0 sm:$0xff]  ;;  %p1434_p3 = pnand %p1433_p2, %p1429_p13 }
  0x21   : > { %v311_v7 = vadd.f32 %v1385_v3, %v310_v6  ;;  %530 = vmatpush.msrb.mxu0 %v354_v38  ;;  %v365_v5 = vld [vmem:[%s1955_s3 + $0xe0] sm:$0xff] }
  0x22   : > { %490 = vmatpush.msrb.mxu2 %v346_v37  ;;  %550 = vmatpush.msrb.mxu3 %v358_v40  ;;  %v369_v6 = vld [vmem:[%s1955_s3 + $0x100] sm:$0xff] }
  0x23   : > { %v1578_v8 = vsel %vm312_vm1, %v1385_v3, %v311_v7  ;;  %531 = vmatpush.msrb.mxu0 %v353_v42  ;;  %v370_v3 = vld [vmem:[%s1955_s3 + $0x108] sm:$0xff]  ;;  %v380_v7 = vld [vmem:[%s1955_s3 + $0x158] sm:$0xff]  ;;  %v377_v14 = vld [vmem:[%s1955_s3 + $0x140] sm:$0xff] }
  0x24   : > { %491 = vmatpush.msrb.mxu2 %v345_v41  ;;  %551 = vmatpush.msrb.mxu3 %v357_v44  ;;  %v381_v15 = vld [vmem:[%s1955_s3 + $0x160] sm:$0xff] }
  0x25   : > { %v1376_v17 = vld [vmem:[%s1954_s2 + $0x4] ss:$0 sm:$0xff]  ;;  %v1372_v20 = vld [vmem:[%s1954_s2] ss:$0 sm:$0xff]  ;;  %v1378_v24 = vld [vmem:[%s1954_s2 + $0x5] ss:$0 sm:$0xff] }
  0x26   : > { %v1374_v29 = vld [vmem:[%s1954_s2 + $0x1] ss:$0 sm:$0xff]  ;;  %v1381_v37 = vld [vmem:[%s1954_s2 + $0x7] ss:$0 sm:$0xff]  ;;  %v1377_v38 = vld [vmem:[%s1954_s2 + $0x2] ss:$0 sm:$0xff] }
  0x27   : > { %v1375_v40 = vld [vmem:[%s1954_s2 + $0x3] ss:$0 sm:$0xff] }
  0x8c   : > { %v306_v9 = vpop.xlane.xlu0 %305 }
  0x8d   : > { %v314_v10 = vmul.f32 %v1578_v8, %v306_v9  ;;  %v384_v9 = vld [vmem:[%s1955_s3 + $0x178] sm:$0xff] }
  0x8f   : > { %v1582_v11 = vsub.f32 %v1574_v0, %v314_v10  ;;  %v379_v10 = vld [vmem:[%s1955_s3 + $0x150] sm:$0xff] }
  0x91   : > { %v316_v12 = vmul.f32 %v1582_v11, %v1582_v11 }
  0x93   : > { %v317_v13 = vsel %vm303_vm0, %v316_v12, 0.0  ;;  %v378_v12 = vld [vmem:[%s1955_s3 + $0x148] sm:$0xff] }
  0x94   : > { %318 = vadd.xlane.f32.xlu0 %v317_v13  ;;  %v382_v13 = vld [vmem:[%s1955_s3 + $0x168] sm:$0xff] }
 0x107   : > { %v319_v36 = vpop.xlane.xlu0 %318 }
 0x108   : > { %v320_v39 = vmul.f32 %v319_v36, %v1578_v8  ;;  %v1380_v36 = vld [vmem:[%s1954_s2 + $0x6] ss:$0 sm:$0xff] }
 0x10a   : > { %v321_v43 = vadd.f32 1e-05, %v320_v39 }
 0x10c   : > { %1386 = vrsqrt.f32 %v321_v43  ;;  %vm328_vm3 = vweird.f32 %v321_v43 }
 0x112   : > { %v1387_v45 = vpop.eup %1386 }
 0x113   : > { %v323_v46 = vmul.f32 %v1387_v45, %v321_v43  ;;  %vm329_vm2 = vweird.f32 %v1387_v45 }
 0x114   : > { %vm330_vm4 = vmor %vm328_vm3, %vm329_vm2 }
 0x115   : > { %v324_v47 = vmul.f32 %v1387_v45, %v323_v46  ;;  %v1382_v46 = vld [vmem:[%s1954_s2 + $0xa] ss:$0 sm:$0xff] }
 0x117   : > { %v325_v48 = vmul.f32 0.5, %v324_v47  ;;  %v1383_v47 = vld [vmem:[%s1954_s2 + $0xb] ss:$0 sm:$0xff] }
 0x119   : > { %v326_v50 = vsub.f32 1.5, %v325_v48 }
 0x11b   : > { %v327_v51 = vmul.f32 %v1387_v45, %v326_v50 }
 0x11d   : > { %v331_v53 = vsel %vm330_vm4, %v1387_v45, %v327_v51 }
 0x11e   : > { %v332_v55 = vmul.f32 %v331_v53, %v1582_v11  ;;  %v383_v11 = vld [vmem:[%s1955_s3 + $0x170] sm:$0xff] }
 0x120   : > { %v334_v56 = vmul.f32 %v333_v52, %v332_v55 }
 0x122   : > { %v336_v57 = vadd.f32 %v335_v54, %v334_v56  ;;  %v785_v54 = vld [vmem:[%s1959_s7] sm:$0xff] }
 0x124   : > { %1298 = vmatmul.msk.f32.vlgmr.msra.gmra.mxu0 %vm303_vm0, %v336_v57  ;;  %1299 = vmatmul.msk.f32.vlgmr.msra.gmra.mxu2 %vm303_vm0, %v336_v57 }
 0x125   : > { %1301 = vmatmul.msk.f32.vlgmr.msra.gmra.mxu3 %vm303_vm0, %v336_v57  ;;  %1307 = vmatmul.msk.f32.vlgmr.msra.gmra.mxu1 %vm303_vm0, %v336_v57 }
 0x126   : > { %568 = vmatpush.msra.mxu2 %v364_v58  ;;  %588 = vmatpush.msra.mxu3 %v368_v59 }
 0x127   : > { %608 = vmatpush.msra.mxu0 %v372_v60 }
 0x128   : > { %569 = vmatpush.msra.mxu2 %v363_v61  ;;  %589 = vmatpush.msra.mxu3 %v367_v62 }
 0x129   : > { %609 = vmatpush.msra.mxu0 %v371_v63 }
 0x12a   : > { %570 = vmatpush.msra.mxu2 %v362_v1  ;;  %590 = vmatpush.msra.mxu3 %v366_v2 }
 0x12b   : > { %610 = vmatpush.msra.mxu0 %v370_v3 }
 0x12c   : > { %1300 = vmatmul.msk.f32.vlgmr.msrb.gmra.mxu2 %vm303_vm0, %v336_v57  ;;  %1302 = vmatmul.msk.f32.vlgmr.msrb.gmra.mxu0 %vm303_vm0, %v336_v57 }
 0x12d   : > { %1303 = vmatmul.msk.f32.vlgmr.msrb.gmra.mxu3 %vm303_vm0, %v336_v57  ;;  %571 = vmatpush.msra.mxu2 %v361_v4 }
 0x12e   : > { %591 = vmatpush.msra.mxu3 %v365_v5  ;;  %611 = vmatpush.msra.mxu0 %v369_v6 }
 0x12f   : > { %648 = vmatpush.msrb.mxu2 %v380_v7 }
 0x130   : > { %668 = vmatpush.msrb.mxu3 %v384_v9 }
 0x131   : > { %649 = vmatpush.msrb.mxu2 %v379_v10 }
 0x132   : > { %669 = vmatpush.msrb.mxu3 %v383_v11 }
 0x133   : > { %650 = vmatpush.msrb.mxu2 %v378_v12 }
 0x134   : > { %670 = vmatpush.msrb.mxu3 %v382_v13  ;;  %1304 = vmatmul.msk.f32.vlgmr.msra.gmra.mxu2 %vm303_vm0, %v336_v57 }
 0x135   : > { %1306 = vmatmul.msk.f32.vlgmr.msra.gmra.mxu0 %vm303_vm0, %v336_v57  ;;  %1305 = vmatmul.msk.f32.vlgmr.msra.gmra.mxu3 %vm303_vm0, %v336_v57 }
 0x136   : > { %651 = vmatpush.msrb.mxu2 %v377_v14  ;;  %671 = vmatpush.msrb.mxu3 %v381_v15 }
 0x13c   : > { %1308 = vmatmul.msk.f32.vlgmr.msrb.gmra.mxu2 %vm303_vm0, %v336_v57 }
 0x13d   : > { %1309 = vmatmul.msk.f32.vlgmr.msrb.gmra.mxu3 %vm303_vm0, %v336_v57 }
 0x1a1   : > { %v453_v16 = vpop.f32.mrf.mxu0 }
 0x1a2   : > { %v454_v23 = vadd.f32 %v1372_v20, %v453_v16  ;;  %v633_v27 = vpop.f32.mrf.mxu1 }
 0x1a3   : > { %v634_v33 = vadd.f32 %v1373_v25, %v633_v27 }
 0x1a7   : > { %v473_v18 = vpop.f32.mrf.mxu2 }
 0x1a8   : > { %v513_v19 = vpop.f32.mrf.mxu3  ;;  %v474_v35 = vadd.f32 %v1374_v29, %v473_v18 }
 0x1a9   : > { %v533_v21 = vpop.f32.mrf.mxu0  ;;  %v514_v45 = vadd.f32 %v1375_v40, %v513_v19 }
 0x1aa   : > { %v534_v22 = vadd.f32 %v1376_v17, %v533_v21 }
 0x1ac   : > { %1310 = vmatpush.xpose.msk.msrb.mxu0 %vm676_vm5, %v534_v22 }
 0x1af   : > { %v493_v28 = vpop.f32.mrf.mxu2  ;;  %1311 = vmatmul.msk.f32.vlgmr.msrb.gmra.mxu0 %vm676_vm5, %v454_v23 }
 0x1b0   : > { %v553_v30 = vpop.f32.mrf.mxu3  ;;  %v494_v44 = vadd.f32 %v1377_v38, %v493_v28 }
 0x1b1   : > { %v554_v31 = vadd.f32 %v1378_v24, %v553_v30 }
 0x1b2   : > { %v613_v32 = vpop.f32.mrf.mxu0 }
 0x1b3   : > { %v614_v34 = vadd.f32 %v1379_v26, %v613_v32  ;;  %1312 = vmatpush.xpose.msk.msrb.mxu1 %vm676_vm5, %v554_v31 }
 0x1b5   : > { %904 = vmatpush.msra.mxu0 %v614_v34 }
 0x1b6   : > { %1313 = vmatmul.msk.f32.vlgmr.msrb.gmra.mxu1 %vm676_vm5, %v474_v35 }
 0x1b7   : > { %927 = vmatpush.msra.mxu1 %v634_v33  ;;  %v573_v39 = vpop.f32.mrf.mxu2 }
 0x1b8   : > { %v574_v41 = vadd.f32 %v1380_v36, %v573_v39  ;;  %v593_v42 = vpop.f32.mrf.mxu3 }
 0x1b9   : > { %v594_v43 = vadd.f32 %v1381_v37, %v593_v42 }
 0x1ba   : > { %1314 = vmatpush.xpose.msk.msra.mxu2 %vm676_vm5, %v574_v41 }
 0x1bb   : > { %1316 = vmatpush.xpose.msk.msra.mxu3 %vm676_vm5, %v594_v43 }
 0x1bd   : > { %1315 = vmatmul.msk.f32.vlgmr.msra.gmra.mxu2 %vm676_vm5, %v494_v44 }
 0x1be   : > { %1317 = vmatmul.msk.f32.vlgmr.msra.gmra.mxu3 %vm676_vm5, %v514_v45 }
 0x1bf   : > { %v653_v48 = vpop.f32.mrf.mxu2 }
 0x1c0   : > { %v654_v50 = vadd.f32 %v1382_v46, %v653_v48  ;;  %v673_v51 = vpop.f32.mrf.mxu3 }
 0x1c1   : > { %v674_v52 = vadd.f32 %v1383_v47, %v673_v51 }
 0x1c2   : > { %950 = vmatpush.msrb.mxu2 %v654_v50 }
 0x1c3   : > { %973 = vmatpush.msrb.mxu3 %v674_v52 }
 0x22c   : > { %v700_v53 = vpop.f32.mrf.mxu0 }
 0x22d   : > { %v781_v55 = vmul.f32 2.828427, %v700_v53 }
 0x22f   : > { %v786_v56 = vadd.f32 %v785_v54, %v781_v55 }
 0x231   : > { %v790_v57 = vsel %vm676_vm5, %v786_v56, -inf }
 0x232   : > { %791 = vmax.xlane.f32.xlu2 %v790_v57 }
 0x233   : > { %v726_v58 = vpop.f32.mrf.mxu1 }
 0x234   : > { %v782_v59 = vmul.f32 2.828427, %v726_v58 }
 0x236   : > { %v787_v60 = vadd.f32 %v785_v54, %v782_v59 }
 0x238   : > { %v793_v61 = vsel %vm676_vm5, %v787_v60, -inf }
 0x23a   : > { %794 = vmax.xlane.f32.xlu2 %v793_v61 }
 0x240   : > { %v752_v62 = vpop.f32.mrf.mxu2 }
 0x241   : > { %v783_v63 = vmul.f32 2.828427, %v752_v62  ;;  %v778_v1 = vpop.f32.mrf.mxu3 }
 0x242   : > { %v784_v3 = vmul.f32 2.828427, %v778_v1 }
 0x243   : > { %v788_v2 = vadd.f32 %v785_v54, %v783_v63 }
 0x244   : > { %v789_v5 = vadd.f32 %v785_v54, %v784_v3 }
 0x245   : > { %v796_v4 = vsel %vm676_vm5, %v788_v2, -inf }
 0x246   : > { %797 = vmax.xlane.f32.xlu1 %v796_v4  ;;  %v799_v6 = vsel %vm676_vm5, %v789_v5, -inf }
 0x24e   : > { %800 = vmax.xlane.f32.xlu1 %v799_v6 }
 0x2a5   : > { %v792_v7 = vpop.xlane.xlu2 %791 }
 0x2a6   : > { %v802_v9 = vsub.f32 %v786_v56, %v792_v7 }
 0x2a8   : > { %v806_v10 = vmul.f32 1.442695, %v802_v9 }
 0x2aa   : > { %1388 = vpow2.f32 %v806_v10 }
 0x2ad   : > { %v795_v13 = vpop.xlane.xlu2 %794 }
 0x2ae   : > { %v803_v16 = vsub.f32 %v787_v60, %v795_v13 }
 0x2b0   : > { %v1389_v11 = vpop.eup %1388  ;;  %v808_v18 = vmul.f32 1.442695, %v803_v16  ;;  %v980_v16 = vld [vmem:[%s1956_s4 + $0x10] sm:$0xff] }
 0x2b1   : > { %v814_v12 = vsel %vm676_vm5, %v1389_v11, 0.0  ;;  %1046 = vmatpush.msra.mxu2 %v980_v16  ;;  %v1183_v16 = vld [vmem:[%s1958_s6 + $0x28] sm:$0xff] }
 0x2b2   : > { %815 = vadd.xlane.f32.xlu2 %v814_v12 }
 0x2b9   : > { %v798_v14 = vpop.xlane.xlu1 %797 }
 0x2ba   : > { %v804_v15 = vsub.f32 %v788_v2, %v798_v14 }
 0x2bc   : > { %v810_v17 = vmul.f32 1.442695, %v804_v15  ;;  %v978_v15 = vld [vmem:[%s1956_s4] sm:$0xff] }
 0x2bd   : > { %1000 = vmatpush.msrb.mxu0 %v978_v15  ;;  %v1184_v15 = vld [vmem:[%s1958_s6 + $0x30] sm:$0xff] }
 0x2be   : > { %1390 = vpow2.f32 %v810_v17  ;;  %v979_v17 = vld [vmem:[%s1956_s4 + $0x8] sm:$0xff] }
 0x2bf   : > { %1392 = vpow2.f32 %v808_v18  ;;  %1023 = vmatpush.msrb.mxu1 %v979_v17  ;;  %v981_v18 = vld [vmem:[%s1956_s4 + $0x18] sm:$0xff]  ;;  %v1182_v17 = vld [vmem:[%s1958_s6 + $0x20] sm:$0xff] }
 0x2c0   : > { %1069 = vmatpush.msra.mxu3 %v981_v18 }
 0x2c1   : > { %v801_v19 = vpop.xlane.xlu1 %800 }
 0x2c2   : > { %v805_v20 = vsub.f32 %v789_v5, %v801_v19 }
 0x2c4   : > { %v1391_v21 = vpop.eup %1390  ;;  %v812_v22 = vmul.f32 1.442695, %v805_v20 }
 0x2c5   : > { %v820_v23 = vsel %vm676_vm5, %v1391_v21, 0.0  ;;  %v1805_v24 = vpop.eup %1392 }
 0x2c6   : > { %1394 = vpow2.f32 %v812_v22  ;;  %821 = vadd.xlane.f32.xlu0 %v820_v23  ;;  %v817_v27 = vsel %vm676_vm5, %v1805_v24, 0.0 }
 0x2cc   : > { %v1807_v25 = vpop.eup %1394 }
 0x2cd   : > { %v823_v26 = vsel %vm676_vm5, %v1807_v25, 0.0 }
 0x2ce   : > { %824 = vadd.xlane.f32.xlu1 %v823_v26  ;;  %818 = vadd.xlane.f32.xlu0 %v817_v27 }
 0x325   : > { %v816_v28 = vpop.xlane.xlu2 %815 }
 0x326   : > { %1396 = vrcp.f32 %v816_v28  ;;  %v837_v32 = vand.u32 2147483648, %v816_v28  ;;  %v835_v34 = vand.u32 2147483647, %v816_v28  ;;  %vm831_vm7 = vweird.f32 %v816_v28 }
 0x328   : > { %v838_v36 = vor.u32 1.1754944e-38, %v837_v32  ;;  %vm836_vm9 = vcmp.eq.f32.partialorder %v835_v34, 8.507059e+37  ;;  %v1082_v34 = vperm.slane %v1675_v49, 4 }
 0x32c   : > { %v1397_v29 = vpop.eup %1396 }
 0x32d   : > { %v827_v30 = vmul.f32 %v1397_v29, %v816_v28  ;;  %vm832_vm6 = vweird.f32 %v1397_v29 }
 0x32e   : > { %vm833_vm8 = vmor %vm831_vm7, %vm832_vm6 }
 0x32f   : > { %v828_v31 = vsub.f32 1.0, %v827_v30 }
 0x331   : > { %v829_v33 = vmul.f32 %v1397_v29, %v828_v31 }
 0x333   : > { %v830_v35 = vadd.f32 %v1397_v29, %v829_v33 }
 0x335   : > { %v834_v37 = vsel %vm833_vm8, %v1397_v29, %v830_v35 }
 0x336   : > { %v839_v38 = vsel %vm836_vm9, %v838_v36, %v834_v37 }
 0x337   : > { %v840_v39 = vmul.f32 %v1389_v11, %v839_v38 }
 0x339   : > { %v822_v40 = vpop.xlane.xlu0 %821  ;;  %1318 = vmatmul.msk.f32.vlgmr.msra.gmra.mxu0 %vm676_vm5, %v840_v39 }
 0x33a   : > { %1398 = vrcp.f32 %v822_v40  ;;  %v867_v46 = vand.u32 2147483648, %v822_v40  ;;  %v865_v48 = vand.u32 2147483647, %v822_v40  ;;  %vm861_vm11 = vweird.f32 %v822_v40 }
 0x33c   : > { %v868_v52 = vor.u32 1.1754944e-38, %v867_v46  ;;  %vm866_vm13 = vcmp.eq.f32.partialorder %v865_v48, 8.507059e+37 }
 0x340   : > { %v1399_v41 = vpop.eup %1398 }
 0x341   : > { %v857_v42 = vmul.f32 %v1399_v41, %v822_v40  ;;  %v825_v43 = vpop.xlane.xlu1 %824  ;;  %v819_v44 = vpop.xlane.xlu0 %818  ;;  %vm862_vm10 = vweird.f32 %v1399_v41 }
 0x342   : > { %1400 = vrcp.f32 %v825_v43  ;;  %vm863_vm12 = vmor %vm861_vm11, %vm862_vm10  ;;  %v882_v60 = vand.u32 2147483648, %v825_v43  ;;  %v880_v63 = vand.u32 2147483647, %v825_v43  ;;  %v852_v1 = vand.u32 2147483648, %v819_v44 }
 0x343   : > { %v858_v45 = vsub.f32 1.0, %v857_v42  ;;  %1402 = vrcp.f32 %v819_v44  ;;  %v850_v3 = vand.u32 2147483647, %v819_v44  ;;  %vm876_vm1 = vweird.f32 %v825_v43 }
 0x344   : > { %v883_v5 = vor.u32 1.1754944e-38, %v882_v60  ;;  %vm846_vm3 = vweird.f32 %v819_v44  ;;  %vm881_vm4 = vcmp.eq.f32.partialorder %v880_v63, 8.507059e+37  ;;  %v853_v9 = vor.u32 1.1754944e-38, %v852_v1  ;;  %v1191_v1 = vld [vmem:[%s1958_s6 + $0x68] sm:$0xff] }
 0x345   : > { %v859_v47 = vmul.f32 %v1399_v41, %v858_v45  ;;  %vm851_vm7 = vcmp.eq.f32.partialorder %v850_v3, 8.507059e+37  ;;  %v1110_v45 = vld [vmem:[%s1957_s5] sm:$0xff]  ;;  %v1114_v63 = vperm.slane %v1675_v49, 5 }
 0x346   : > { %v1190_v3 = vld [vmem:[%s1958_s6 + $0x60] sm:$0xff] }
 0x347   : > { %v860_v50 = vadd.f32 %v1399_v41, %v859_v47 }
 0x348   : > { %v1401_v51 = vpop.eup %1400 }
 0x349   : > { %v1403_v53 = vpop.eup %1402  ;;  %v864_v54 = vsel %vm863_vm12, %v1399_v41, %v860_v50  ;;  %v872_v55 = vmul.f32 %v1401_v51, %v825_v43  ;;  %vm877_vm14 = vweird.f32 %v1401_v51  ;;  %v1113_v43 = vld [vmem:[%s1957_s5 + $0x18] sm:$0xff] }
 0x34a   : > { %v869_v56 = vsel %vm866_vm13, %v868_v52, %v864_v54  ;;  %v842_v57 = vmul.f32 %v1403_v53, %v819_v44  ;;  %vm847_vm15 = vweird.f32 %v1403_v53  ;;  %vm878_vm2 = vmor %vm876_vm1, %vm877_vm14  ;;  %1130 = vmatpush.msra.mxu0 %v1113_v43  ;;  %v1111_v44 = vld [vmem:[%s1957_s5 + $0x8] sm:$0xff] }
 0x34b   : > { %v873_v58 = vsub.f32 1.0, %v872_v55  ;;  %v870_v59 = vmul.f32 %v1391_v21, %v869_v56  ;;  %vm848_vm6 = vmor %vm846_vm3, %vm847_vm15  ;;  %v1106_v56 = vperm.slane %v1675_v49, 2 }
 0x34c   : > { %v843_v61 = vsub.f32 1.0, %v842_v57 }
 0x34d   : > { %v874_v62 = vmul.f32 %v1401_v51, %v873_v58  ;;  %1320 = vmatmul.msk.f32.vlgmr.msrb.gmra.mxu2 %vm676_vm5, %v870_v59  ;;  %v1108_v59 = vperm.slane %v1675_v49, 3 }
 0x34e   : > { %v844_v2 = vmul.f32 %v1403_v53, %v843_v61 }
 0x34f   : > { %v875_v4 = vadd.f32 %v1401_v51, %v874_v62  ;;  %v1192_v62 = vld [vmem:[%s1958_s6 + $0x70] sm:$0xff] }
 0x350   : > { %v845_v6 = vadd.f32 %v1403_v53, %v844_v2 }
 0x351   : > { %v879_v7 = vsel %vm878_vm2, %v1401_v51, %v875_v4 }
 0x352   : > { %v884_v10 = vsel %vm881_vm4, %v883_v5, %v879_v7  ;;  %v849_v11 = vsel %vm848_vm6, %v1403_v53, %v845_v6  ;;  %v1189_v5 = vld [vmem:[%s1958_s6 + $0x58] sm:$0xff]  ;;  %v1188_v7 = vld [vmem:[%s1958_s6 + $0x50] sm:$0xff] }
 0x353   : > { %v854_v12 = vsel %vm851_vm7, %v853_v9, %v849_v11  ;;  %v885_v13 = vmul.f32 %v1807_v25, %v884_v10  ;;  %v1187_v10 = vld [vmem:[%s1958_s6 + $0x48] sm:$0xff] }
 0x354   : > { %v855_v14 = vmul.f32 %v1805_v24, %v854_v12  ;;  %v1186_v12 = vld [vmem:[%s1958_s6 + $0x40] sm:$0xff] }
 0x355   : > { %1321 = vmatmul.msk.f32.vlgmr.msrb.gmra.mxu3 %vm676_vm5, %v885_v13 }
 0x356   : > { %1319 = vmatmul.msk.f32.vlgmr.msra.gmra.mxu1 %vm676_vm5, %v855_v14  ;;  %v1185_v14 = vld [vmem:[%s1958_s6 + $0x38] sm:$0xff] }
 0x3b6   : > { %v906_v19 = vpop.f32.mrf.mxu0 }
 0x3b7   : > { %1322 = vmatmul.msk.f32.vlgmr.msrb.gmra.mxu0 %vm676_vm5, %v906_v19 }
 0x3d0   : > { %v952_v20 = vpop.f32.mrf.mxu2 }
 0x3d1   : > { %1324 = vmatmul.msk.f32.vlgmr.msra.gmra.mxu2 %vm676_vm5, %v952_v20  ;;  %v1181_v20 = vld [vmem:[%s1958_s6 + $0x18] sm:$0xff] }
 0x3d3   : > { %v929_v21 = vpop.f32.mrf.mxu1 }
 0x3d4   : > { %1323 = vmatmul.msk.f32.vlgmr.msrb.gmra.mxu1 %vm676_vm5, %v929_v21 }
 0x3d8   : > { %v975_v22 = vpop.f32.mrf.mxu3 }
 0x3d9   : > { %1325 = vmatmul.msk.f32.vlgmr.msra.gmra.mxu3 %vm676_vm5, %v975_v22  ;;  %v1180_v22 = vld [vmem:[%s1958_s6 + $0x10] sm:$0xff] }
 0x434   : > { %v1002_v24 = vpop.f32.mrf.mxu0 }
 0x435   : > { %v1074_v27 = vsel %vm303_vm0, %v1002_v24, 0.0 }
 0x451   : > { %v1025_v23 = vpop.f32.mrf.mxu1 }
 0x452   : > { %v1075_v26 = vsel %vm303_vm0, %v1025_v23, 0.0 }
 0x453   : > { %v1076_v29 = vadd.f32 %v1075_v26, %v1074_v27  ;;  %v1179_v26 = vld [vmem:[%s1958_s6 + $0x8] sm:$0xff]  ;;  %v1178_v27 = vld [vmem:[%s1958_s6] sm:$0xff] }
 0x454   : > { %v1048_v25 = vpop.f32.mrf.mxu2 }
 0x455   : > { %v1077_v28 = vsel %vm303_vm0, %v1048_v25, 0.0 }
 0x456   : > { %v1078_v30 = vadd.f32 %v1077_v28, %v1076_v29 }
 0x45c   : > { %v1071_v31 = vpop.f32.mrf.mxu3 }
 0x45d   : > { %v1079_v32 = vsel %vm303_vm0, %v1071_v31, 0.0 }
 0x45e   : > { %v1080_v33 = vadd.f32 %v1079_v32, %v1078_v30 }
 0x460   : > { %v1081_v35 = vadd.f32 %v1080_v33, %v1574_v0  ;;  %v1112_v0 = vld [vmem:[%s1957_s5 + $0x10] sm:$0xff] }
 0x461   : > { %1131 = vmatpush.msra.mxu0 %v1112_v0 }
 0x462   : > { %v1841_v36 = vadd.f32 %v1082_v34, %v1081_v35 }
 0x463   : > { %1132 = vmatpush.msra.mxu0 %v1111_v44 }
 0x464   : > { %v1084_v37 = vsel %vm303_vm0, %v1841_v36, 0.0 }
 0x465   : > { %1085 = vadd.xlane.f32.xlu1 %v1084_v37  ;;  %1133 = vmatpush.msra.mxu0 %v1110_v45 }
 0x4d8   : > { %v1086_v38 = vpop.xlane.xlu1 %1085 }
 0x4d9   : > { %v1087_v39 = vmul.f32 %v1086_v38, %v1578_v8 }
 0x4db   : > { %v1088_v40 = vsub.f32 %v1841_v36, %v1087_v39 }
 0x4dd   : > { %v1089_v41 = vmul.f32 %v1088_v40, %v1088_v40 }
 0x4df   : > { %v1090_v42 = vsel %vm303_vm0, %v1089_v41, 0.0 }
 0x4e0   : > { %1091 = vadd.xlane.f32.xlu2 %v1090_v42 }
 0x553   : > { %v1092_v46 = vpop.xlane.xlu2 %1091 }
 0x554   : > { %v1093_v47 = vmul.f32 %v1092_v46, %v1578_v8  ;;  %v1193_v8 = vld [vmem:[%s1958_s6 + $0x78] sm:$0xff] }
 0x555   : > { %1195 = vmatpush.msra.mxu1 %v1193_v8 }
 0x556   : > { %v1094_v48 = vadd.f32 1e-05, %v1093_v47  ;;  %v1475_v47 = vmov -1.0  }
 0x557   : > { %1196 = vmatpush.msra.mxu1 %v1192_v62 }
 0x558   : > { %1404 = vrsqrt.f32 %v1094_v48  ;;  %vm1101_vm8 = vweird.f32 %v1094_v48 }
 0x559   : > { %1197 = vmatpush.msra.mxu1 %v1191_v1 }
 0x55b   : > { %1198 = vmatpush.msra.mxu1 %v1190_v3 }
 0x55d   : > { %1199 = vmatpush.msra.mxu1 %v1189_v5 }
 0x55e   : > { %v1405_v50 = vpop.eup %1404 }
 0x55f   : > { %v1096_v51 = vmul.f32 %v1405_v50, %v1094_v48  ;;  %vm1102_vm5 = vweird.f32 %v1405_v50  ;;  %1200 = vmatpush.msra.mxu1 %v1188_v7 }
 0x560   : > { %vm1103_vm9 = vmor %vm1101_vm8, %vm1102_vm5 }
 0x561   : > { %v1097_v52 = vmul.f32 %v1405_v50, %v1096_v51  ;;  %1201 = vmatpush.msra.mxu1 %v1187_v10 }
 0x563   : > { %v1098_v53 = vmul.f32 0.5, %v1097_v52  ;;  %1202 = vmatpush.msra.mxu1 %v1186_v12 }
 0x565   : > { %v1099_v54 = vsub.f32 1.5, %v1098_v53  ;;  %1203 = vmatpush.msra.mxu1 %v1185_v14 }
 0x567   : > { %v1100_v55 = vmul.f32 %v1405_v50, %v1099_v54  ;;  %1204 = vmatpush.msra.mxu1 %v1184_v15  ;;  %v1194_v54 = vperm.slane %v1675_v49, 6 }
 0x569   : > { %v1104_v57 = vsel %vm1103_vm9, %v1405_v50, %v1100_v55  ;;  %1205 = vmatpush.msra.mxu1 %v1183_v16 }
 0x56a   : > { %v1105_v58 = vmul.f32 %v1104_v57, %v1088_v40 }
 0x56b   : > { %1206 = vmatpush.msra.mxu1 %v1182_v17 }
 0x56c   : > { %v1107_v60 = vmul.f32 %v1106_v56, %v1105_v58 }
 0x56d   : > { %1207 = vmatpush.msra.mxu1 %v1181_v20 }
 0x56e   : > { %v1109_v61 = vadd.f32 %v1108_v59, %v1107_v60 }
 0x56f   : > { %1208 = vmatpush.msra.mxu1 %v1180_v22 }
 0x570   : > { %1326 = vmatmul.msk.f32.vlgmr.msra.gmra.mxu0 %vm303_vm0, %v1109_v61 }
 0x571   : > { %1209 = vmatpush.msra.mxu1 %v1179_v26 }
 0x573   : > { %1210 = vmatpush.msra.mxu1 %v1178_v27 }
 0x5ed   : > { %v1135_v2 = vpop.f32.mrf.mxu0 }
 0x5ee   : > { %v1877_v4 = vadd.f32 %v1135_v2, %v1114_v63 }
 0x5f0   : > { %v1139_v6 = vmul.f32 0.70710677, %v1877_v4  ;;  %v1138_v51 = vmul.f32 0.5, %v1877_v4 }
 0x5f2   : > { %v1142_v9 = vand.u32 2147483647, %v1139_v6  ;;  %vm1140_vm14 = vcmp.ge.f32.partialorder %v1139_v6, 0.0 }
 0x5f3   : > { %v1141_v48 = vsel %vm1140_vm14, 1.0, %v1475_v47 }
 0x5f4   : > { %v1143_v11 = vmul.f32 0.3275911, %v1142_v9  ;;  %v1169_v32 = vsub.f32 0.0, %v1142_v9 }
 0x5f6   : > { %v1144_v13 = vadd.f32 1.0, %v1143_v11  ;;  %v1170_v35 = vmul.f32 %v1169_v32, %v1142_v9 }
 0x5f8   : > { %1406 = vrcp.f32 %v1144_v13  ;;  %v1156_v23 = vand.u32 2147483648, %v1144_v13  ;;  %v1154_v25 = vand.u32 2147483647, %v1144_v13  ;;  %vm1150_vm11 = vweird.f32 %v1144_v13 }
 0x5f9   : > { %v1171_v39 = vmul.f32 1.442695, %v1170_v35 }
 0x5fa   : > { %v1157_v29 = vor.u32 1.1754944e-38, %v1156_v23  ;;  %vm1155_vm13 = vcmp.eq.f32.partialorder %v1154_v25, 8.507059e+37 }
 0x5fb   : > { %1408 = vpow2.f32 %v1171_v39 }
 0x5fe   : > { %v1407_v18 = vpop.eup %1406 }
 0x5ff   : > { %v1146_v19 = vmul.f32 %v1407_v18, %v1144_v13  ;;  %vm1151_vm10 = vweird.f32 %v1407_v18 }
 0x600   : > { %vm1152_vm12 = vmor %vm1150_vm11, %vm1151_vm10 }
 0x601   : > { %v1147_v21 = vsub.f32 1.0, %v1146_v19  ;;  %v1409_v44 = vpop.eup %1408 }
 0x603   : > { %v1148_v24 = vmul.f32 %v1407_v18, %v1147_v21 }
 0x605   : > { %v1149_v28 = vadd.f32 %v1407_v18, %v1148_v24 }
 0x607   : > { %v1153_v30 = vsel %vm1152_vm12, %v1407_v18, %v1149_v28 }
 0x608   : > { %v1158_v31 = vsel %vm1155_vm13, %v1157_v29, %v1153_v30 }
 0x609   : > { %v1160_v33 = vmul.f32 1.0614054, %v1158_v31 }
 0x60b   : > { %v1161_v34 = vadd.f32 -1.4531521, %v1160_v33 }
 0x60d   : > { %v1162_v37 = vmul.f32 %v1161_v34, %v1158_v31 }
 0x60f   : > { %v1163_v38 = vadd.f32 1.4214138, %v1162_v37 }
 0x611   : > { %v1164_v40 = vmul.f32 %v1163_v38, %v1158_v31 }
 0x613   : > { %v1165_v41 = vadd.f32 -0.28449672, %v1164_v40 }
 0x615   : > { %v1166_v42 = vmul.f32 %v1165_v41, %v1158_v31 }
 0x617   : > { %v1167_v43 = vadd.f32 0.2548296, %v1166_v42 }
 0x619   : > { %v1168_v0 = vmul.f32 %v1167_v43, %v1158_v31 }
 0x61b   : > { %v1173_v45 = vmul.f32 %v1409_v44, %v1168_v0 }
 0x61d   : > { %v1174_v46 = vsub.f32 1.0, %v1173_v45 }
 0x61f   : > { %v1175_v50 = vmul.f32 %v1174_v46, %v1141_v48 }
 0x621   : > { %v1176_v52 = vadd.f32 1.0, %v1175_v50 }
 0x623   : > { %v1177_v53 = vmul.f32 %v1176_v52, %v1138_v51 }
 0x625   : > { %1211 = vmatmul.f32.vlgmr.msra.gmra.mxu1 %v1177_v53 }
 0x6a2   : > { %v1212_v55 = vpop.f32.mrf.mxu1 }
 0x6a3   : > { %v1213_v56 = vadd.f32 %v1212_v55, %v1194_v54 }
 0x6a5   : > { %v1215_v57 = vadd.f32 %v1213_v56, %v1841_v36 }
 0x6a7   : > { %1216 = vst.msk [vmem:[%s296_s18] sm:$0xff] %vm303_vm0, %v1215_v57 }
 0x6a8   : > { %1437 = shalt.err (!%p1434_p3)
}
 0x6a9   : > { %1331 = dma.vmem_to_hbm [thread:$0]  (%p1559_p5), %s1231_s19, 128, %s1233_s20, %s1218_s21  }
 0x6aa PF: > { %p1337_p4 = scmp.ge.s32.totalorder %s1472_s30, 2  ;;  %s1244_s25 = sand.u32 1, %s1460_s27  }
 0x6ab   : > { %s1245_s13 = scalar_lea.sflag [#allocation3], %s1244_s25 }
 0x6ac   : > { %p1334_p7 = pnand %p1337_p4, %p1563_p6 }
 0x6ae   : > { %p1335_p8 = pneg %p1334_p7 }
 0x6b0   : > { %1455 = dma.done.wait (%p1335_p8), %s1245_s13, 128  }
 0x6b1   : > { %1457 = vsyncadd (%p1335_p8), %s1245_s13, 4294967168  ;;  %p18_p9 = scmp.ge.s32.totalorder %s1546_s11, 4   ;;  %s1963_s27 = smov %s1464_s28 }
 0x6b2   : > { %s1964_s28 = smov %s1468_s29  ;;  %s1965_s29 = smov %s1557_s14 }
 0x6b3   : > { %s1966_s30 = smov %s1546_s11  ;;  %20 = sbr.rel (!%p18_p9) target bundleno = 3 (0x3), region = 87 }
 0x6b8   :  { %1251 = vsyncpa [#allocation3], 1 }
 0x6b9   :  { %1253 = vsyncpa [#allocation3 + $0x1], 1 }

</bundles_post_ra>
